<compile_context>
chip_gen: v7x
topology: tpu7x:2x2x1
jax: 0.10.0
libtpu: 0.0.40
codegen_flags: <defaults>
</compile_context>

<pallas_src>
import jax
import jax.numpy as jnp
from jax.experimental import pallas as pl
from jax.experimental.pallas import tpu as pltpu

_LANES = 128
_EPS = 1e-12
_MAX_TILE_ROWS = 4096   # 2 MiB f32 per block; 2 inputs x 2 pipeline bufs = 8 MiB VMEM


def _round_up(x, m):
    return -(-x // m) * m


def _tensorcores_per_chip():
    """Returns 2 only on chips exposing 2 TensorCores per device; else 1."""
    try:
        info = pltpu.get_tpu_info()
        for name in ("tensorcores_per_chip", "num_tensorcores",
                     "cores_per_chip", "num_cores"):
            v = getattr(info, name, None)
            if isinstance(v, int) and v == 2:
                return 2
    except Exception:
        pass
    return 1


def _make_kernel(tile_rows):
    """Kernel with the static tile height closed over."""

    def kernel(pred_ref, gt_ref, loss_ref, npos_ref, loss_acc, npos_acc):
        i = pl.program_id(1)

        # Zero the tiny per-core accumulators at the start of each sweep.
        @pl.when(i == 0)
        def _():
            loss_acc[...] = jnp.zeros_like(loss_acc)
            npos_acc[...] = jnp.zeros_like(npos_acc)

        pred = pred_ref[...].astype(jnp.float32)
        gt = gt_ref[...].astype(jnp.float32)

        is_pos = gt == 1.0
        is_neg = gt < 1.0

        one_m_gt = 1.0 - gt
        sq = one_m_gt * one_m_gt
        neg_weights = sq * sq                    # (1 - gt)^4

        one_m_pred = 1.0 - pred
        log1m = jnp.log(one_m_pred + _EPS)       # shared by pow_term and neg_term
        # (1 - pred)^(2 - 2*pred) == exp((2 - 2*pred) * log(1 - pred + eps));
        # exponent is 0 at pred == 1 so this is exactly 1.0 there, and NaN for
        # out-of-domain pred > 1 (same as torch.pow).
        pow_term = jnp.exp((2.0 * one_m_pred) * log1m)

        pos_term = jnp.log(pred + _EPS) * pow_term
        neg_term = log1m * (pred * pred) * neg_weights

        # Select-based masking: reuse the compares directly, no float casts.
        contrib = jnp.where(is_pos, pos_term, jnp.where(is_neg, neg_term, 0.0))
        pos_cnt = jnp.where(is_pos, 1.0, 0.0)

        # Fold the tile to one vreg-aligned (8, 128) block (pure VPU adds) and
        # accumulate into the 8 KiB scratch once per step.
        loss_acc[...] += jnp.sum(
            contrib.reshape(tile_rows // 8, 8, _LANES), axis=0)
        npos_acc[...] += jnp.sum(
            pos_cnt.reshape(tile_rows // 8, 8, _LANES), axis=0)

        # Final step of this core's sweep: emit the lane-dense partials.
        @pl.when(i == pl.num_programs(1) - 1)
        def _():
            loss_ref[...] = loss_acc[...]
            npos_ref[...] = npos_acc[...]

    return kernel


def equalized_m_focal_loss(pred, gt):
    """JAX/Pallas equivalent of EqualizedMFocalLoss.forward(pred, gt).

    pred, gt: arrays of shape (N, C, H, W). Returns a scalar f32 loss.
    """
    assert pred.shape == gt.shape
    gamma = 2.0
    num_cores = _tensorcores_per_chip()

    # Flatten; keep the native dtype (the kernel casts in VMEM).
    pred_flat = jnp.reshape(pred, (-1,))
    gt_flat = jnp.reshape(gt, (-1,))
    n = pred_flat.shape[0]

    # Sublane multiple for the native dtype (8 for f32, 16 for bf16, 32 for i8)
    # so every block satisfies the packed-dtype min-tile rule.
    mult = max(8, 32 // jnp.dtype(pred.dtype).itemsize)

    rows_raw = -(-n // _LANES)
    tile_rows = min(_MAX_TILE_ROWS, _round_up(rows_raw, mult))
    padded_rows = _round_up(rows_raw, tile_rows * num_cores)
    num_blocks = padded_rows // tile_rows
    blocks_per_core = num_blocks // num_cores

    # Zero padding (pred = 0, gt = 0) contributes exactly 0 to both the loss
    # sum and num_pos, so no in-kernel masking is needed and every block is
    # a full, evenly split tile.
    pad = padded_rows * _LANES - n
    if pad:
        pred_flat = jnp.pad(pred_flat, (0, pad))
        gt_flat = jnp.pad(gt_flat, (0, pad))

    pred2d = jnp.reshape(pred_flat, (padded_rows, _LANES))
    gt2d = jnp.reshape(gt_flat, (padded_rows, _LANES))

    def in_index_map(c, i):
        return (c * blocks_per_core + i, 0)

    if num_cores > 1:
        sem0 = getattr(pltpu, "CORE_PARALLEL", pltpu.PARALLEL)
    else:
        sem0 = pltpu.ARBITRARY

    loss_parts, npos_parts = pl.pallas_call(
        _make_kernel(tile_rows),
        out_shape=(
            jax.ShapeDtypeStruct((num_cores * 8, _LANES), jnp.float32),
            jax.ShapeDtypeStruct((num_cores * 8, _LANES), jnp.float32),
        ),
        grid_spec=pltpu.PrefetchScalarGridSpec(
            num_scalar_prefetch=0,
            grid=(num_cores, blocks_per_core),
            in_specs=[
                pl.BlockSpec((tile_rows, _LANES), in_index_map),
                pl.BlockSpec((tile_rows, _LANES), in_index_map),
            ],
            out_specs=(
                pl.BlockSpec((8, _LANES), lambda c, i: (c, 0)),
                pl.BlockSpec((8, _LANES), lambda c, i: (c, 0)),
            ),
            scratch_shapes=[
                pltpu.VMEM((8, _LANES), jnp.float32),
                pltpu.VMEM((8, _LANES), jnp.float32),
            ],
        ),
        compiler_params=pltpu.CompilerParams(
            dimension_semantics=(sem0, pltpu.ARBITRARY),
        ),
    )(pred2d, gt2d)

    loss_sum = jnp.sum(loss_parts)
    num_pos = jnp.sum(npos_parts)

    # loss = -sum(pos_loss + neg_loss) * gamma / 2, then / num_pos if any.
    loss = -loss_sum * (gamma / 2.0)
    loss = jnp.where(num_pos == 0.0, loss, loss / num_pos)
    return loss


def _reference_jax(pred, gt):
    """Pure-JAX reference mirroring the PyTorch module exactly."""
    gamma = 2.0
    eps = 1e-12
    pos_inds = (gt == 1.0).astype(jnp.float32)
    neg_inds = (gt < 1.0).astype(jnp.float32)
    neg_weights = jnp.power(1.0 - gt, 4.0)
    pos_loss = jnp.log(pred + eps) * jnp.power(1.0 - pred, gamma - gamma * pred) * pos_inds
    neg_loss = jnp.log(1.0 - pred + eps) * jnp.power(pred, gamma) * neg_weights * neg_inds
    num_pos = jnp.sum(pos_inds)
    loss = -(jnp.sum(pos_loss) + jnp.sum(neg_loss)) * gamma / 2.0
    return jnp.where(num_pos == 0.0, loss, loss / num_pos)


if __name__ == "__main__":
    key = jax.random.PRNGKey(0)
    k_pred, k_gt = jax.random.split(key)

    N, C, H, W = 2, 4, 16, 16  # NCHW, same convention as the PyTorch module

    # pred: probabilities strictly inside (0, 1) (e.g. sigmoid outputs).
    pred = jax.random.uniform(k_pred, (N, C, H, W), minval=0.01, maxval=0.99)
    pred = pred.astype(jnp.float32)

    # gt: gaussian-heatmap-style targets in [0, 1] with some exact 1s (peaks).
    gt = jax.random.uniform(k_gt, (N, C, H, W), minval=0.0, maxval=0.95)
    gt = gt.at[:, :, 4, 7].set(1.0)
    gt = gt.at[:, :, 10, 3].set(1.0)
    gt = gt.astype(jnp.float32)

    out = jax.block_until_ready(equalized_m_focal_loss(pred, gt))
    ref = jax.block_until_ready(_reference_jax(pred, gt))
    assert jnp.allclose(out, ref, rtol=1e-4, atol=1e-5), (out, ref)

    print("KERNEL_OK")
</pallas_src>

<mosaic_0001>
module attributes {stable_mosaic.version = 11 : i64} {
  func.func @kernel(%arg0: i32, %arg1: i32, %arg2: memref<16x128xf32, #tpu.memory_space<vmem>>, %arg3: memref<16x128xf32, #tpu.memory_space<vmem>>, %arg4: memref<8x128xf32, #tpu.memory_space<vmem>>, %arg5: memref<8x128xf32, #tpu.memory_space<vmem>>, %arg6: memref<8x128xf32, #tpu.memory_space<vmem>>, %arg7: memref<8x128xf32, #tpu.memory_space<vmem>>) attributes {dimension_semantics = [#tpu.dimension_semantics<arbitrary>, #tpu.dimension_semantics<arbitrary>], iteration_bounds = array<i64: 1, 1>, scalar_prefetch = 0 : i64, scratch_operands = 2 : i64, tpu.core_type = #tpu.core_type<tc>, window_params = [{transform_indices = @transform_0, window_bounds = array<i64: 16, 128>}, {transform_indices = @transform_1, window_bounds = array<i64: 16, 128>}, {transform_indices = @transform_2, window_bounds = array<i64: 8, 128>}, {transform_indices = @transform_3, window_bounds = array<i64: 8, 128>}]} {
    %c0_i32 = arith.constant 0 : i32
    %0 = arith.cmpi eq, %arg1, %c0_i32 : i32
    %1 = arith.extui %0 : i1 to i32
    %c0_i32_0 = arith.constant 0 : i32
    %2 = arith.cmpi ne, %1, %c0_i32_0 : i32
    scf.if %2 {
      %cst_25 = arith.constant 0.000000e+00 : f32
      %48 = vector.broadcast %cst_25 : f32 to vector<8x128xf32>
      %c0_26 = arith.constant 0 : index
      %c0_27 = arith.constant 0 : index
      %49 = vector.load %arg6[%c0_26, %c0_27] : memref<8x128xf32, #tpu.memory_space<vmem>>, vector<8x128xf32>
      tpu.vector_store %arg6[%c0_26, %c0_27], %48 {strides = array<i32>} : memref<8x128xf32, #tpu.memory_space<vmem>>, vector<8x128xf32>,
      %cst_28 = arith.constant 0.000000e+00 : f32
      %50 = vector.broadcast %cst_28 : f32 to vector<8x128xf32>
      %c0_29 = arith.constant 0 : index
      %c0_30 = arith.constant 0 : index
      %51 = vector.load %arg7[%c0_29, %c0_30] : memref<8x128xf32, #tpu.memory_space<vmem>>, vector<8x128xf32>
      tpu.vector_store %arg7[%c0_29, %c0_30], %50 {strides = array<i32>} : memref<8x128xf32, #tpu.memory_space<vmem>>, vector<8x128xf32>,
    } else {
    }
    %c0 = arith.constant 0 : index
    %c0_1 = arith.constant 0 : index
    %3 = vector.load %arg2[%c0, %c0_1] : memref<16x128xf32, #tpu.memory_space<vmem>>, vector<16x128xf32>
    %c0_2 = arith.constant 0 : index
    %c0_3 = arith.constant 0 : index
    %4 = vector.load %arg3[%c0_2, %c0_3] : memref<16x128xf32, #tpu.memory_space<vmem>>, vector<16x128xf32>
    %cst = arith.constant 1.000000e+00 : f32
    %5 = vector.broadcast %cst : f32 to vector<16x128xf32>
    %6 = arith.cmpf oeq, %4, %5 : vector<16x128xf32>
    %cst_4 = arith.constant 1.000000e+00 : f32
    %7 = vector.broadcast %cst_4 : f32 to vector<16x128xf32>
    %8 = arith.cmpf olt, %4, %7 : vector<16x128xf32>
    %cst_5 = arith.constant 1.000000e+00 : f32
    %9 = vector.broadcast %cst_5 : f32 to vector<16x128xf32>
    %10 = arith.subf %9, %4 : vector<16x128xf32>
    %11 = arith.mulf %10, %10 : vector<16x128xf32>
    %12 = arith.mulf %11, %11 : vector<16x128xf32>
    %cst_6 = arith.constant 1.000000e+00 : f32
    %13 = vector.broadcast %cst_6 : f32 to vector<16x128xf32>
    %14 = arith.subf %13, %3 : vector<16x128xf32>
    %cst_7 = arith.constant 9.99999996E-13 : f32
    %15 = vector.broadcast %cst_7 : f32 to vector<16x128xf32>
    %16 = arith.addf %14, %15 : vector<16x128xf32>
    %17 = math.log %16 : vector<16x128xf32>
    %cst_8 = arith.constant 2.000000e+00 : f32
    %18 = vector.broadcast %cst_8 : f32 to vector<16x128xf32>
    %19 = arith.mulf %18, %14 : vector<16x128xf32>
    %20 = arith.mulf %19, %17 : vector<16x128xf32>
    %21 = math.exp %20 : vector<16x128xf32>
    %cst_9 = arith.constant 9.99999996E-13 : f32
    %22 = vector.broadcast %cst_9 : f32 to vector<16x128xf32>
    %23 = arith.addf %3, %22 : vector<16x128xf32>
    %24 = math.log %23 : vector<16x128xf32>
    %25 = arith.mulf %24, %21 : vector<16x128xf32>
    %26 = arith.mulf %3, %3 : vector<16x128xf32>
    %27 = arith.mulf %17, %26 : vector<16x128xf32>
    %28 = arith.mulf %27, %12 : vector<16x128xf32>
    %cst_10 = arith.constant 0.000000e+00 : f32
    %29 = vector.broadcast %cst_10 : f32 to vector<16x128xf32>
    %30 = arith.select %8, %28, %29 : vector<16x128xi1>, vector<16x128xf32>
    %31 = arith.select %6, %25, %30 : vector<16x128xi1>, vector<16x128xf32>
    %cst_11 = arith.constant 1.000000e+00 : f32
    %cst_12 = arith.constant 0.000000e+00 : f32
    %32 = vector.broadcast %cst_11 : f32 to vector<16x128xf32>
    %33 = vector.broadcast %cst_12 : f32 to vector<16x128xf32>
    %34 = arith.select %6, %32, %33 : vector<16x128xi1>, vector<16x128xf32>
    %c0_13 = arith.constant 0 : index
    %c0_14 = arith.constant 0 : index
    %35 = vector.load %arg6[%c0_13, %c0_14] : memref<8x128xf32, #tpu.memory_space<vmem>>, vector<8x128xf32>
    %36 = vector.shape_cast %31 : vector<16x128xf32> to vector<2x8x128xf32>
    %cst_15 = arith.constant dense<0.000000e+00> : vector<8x128xf32>
    %37 = vector.multi_reduction <add>, %36, %cst_15 [0] : vector<2x8x128xf32> to vector<8x128xf32>
    %38 = arith.addf %35, %37 : vector<8x128xf32>
    %c0_16 = arith.constant 0 : index
    %c0_17 = arith.constant 0 : index
    %39 = vector.load %arg6[%c0_16, %c0_17] : memref<8x128xf32, #tpu.memory_space<vmem>>, vector<8x128xf32>
    tpu.vector_store %arg6[%c0_16, %c0_17], %38 {strides = array<i32>} : memref<8x128xf32, #tpu.memory_space<vmem>>, vector<8x128xf32>,
    %c0_18 = arith.constant 0 : index
    %c0_19 = arith.constant 0 : index
    %40 = vector.load %arg7[%c0_18, %c0_19] : memref<8x128xf32, #tpu.memory_space<vmem>>, vector<8x128xf32>
    %41 = vector.shape_cast %34 : vector<16x128xf32> to vector<2x8x128xf32>
    %cst_20 = arith.constant dense<0.000000e+00> : vector<8x128xf32>
    %42 = vector.multi_reduction <add>, %41, %cst_20 [0] : vector<2x8x128xf32> to vector<8x128xf32>
    %43 = arith.addf %40, %42 : vector<8x128xf32>
    %c0_21 = arith.constant 0 : index
    %c0_22 = arith.constant 0 : index
    %44 = vector.load %arg7[%c0_21, %c0_22] : memref<8x128xf32, #tpu.memory_space<vmem>>, vector<8x128xf32>
    tpu.vector_store %arg7[%c0_21, %c0_22], %43 {strides = array<i32>} : memref<8x128xf32, #tpu.memory_space<vmem>>, vector<8x128xf32>,
    %c0_i32_23 = arith.constant 0 : i32
    %45 = arith.cmpi eq, %arg1, %c0_i32_23 : i32
    %46 = arith.extui %45 : i1 to i32
    %c0_i32_24 = arith.constant 0 : i32
    %47 = arith.cmpi ne, %46, %c0_i32_24 : i32
    scf.if %47 {
      %c0_25 = arith.constant 0 : index
      %c0_26 = arith.constant 0 : index
      %48 = vector.load %arg6[%c0_25, %c0_26] : memref<8x128xf32, #tpu.memory_space<vmem>>, vector<8x128xf32>
      %c0_27 = arith.constant 0 : index
      %c0_28 = arith.constant 0 : index
      %49 = vector.load %arg4[%c0_27, %c0_28] : memref<8x128xf32, #tpu.memory_space<vmem>>, vector<8x128xf32>
      tpu.vector_store %arg4[%c0_27, %c0_28], %48 {strides = array<i32>} : memref<8x128xf32, #tpu.memory_space<vmem>>, vector<8x128xf32>,
      %c0_29 = arith.constant 0 : index
      %c0_30 = arith.constant 0 : index
      %50 = vector.load %arg7[%c0_29, %c0_30] : memref<8x128xf32, #tpu.memory_space<vmem>>, vector<8x128xf32>
      %c0_31 = arith.constant 0 : index
      %c0_32 = arith.constant 0 : index
      %51 = vector.load %arg5[%c0_31, %c0_32] : memref<8x128xf32, #tpu.memory_space<vmem>>, vector<8x128xf32>
      tpu.vector_store %arg5[%c0_31, %c0_32], %50 {strides = array<i32>} : memref<8x128xf32, #tpu.memory_space<vmem>>, vector<8x128xf32>,
    } else {
    }
    return
  }
  func.func @transform_0(%arg0: i32, %arg1: i32) -> (i32, i32) {
    %c1_i32 = arith.constant 1 : i32
    %0 = arith.muli %arg0, %c1_i32 : i32
    %1 = arith.addi %0, %arg1 : i32
    %c0_i32 = arith.constant 0 : i32
    %c0_i32_0 = arith.constant 0 : i32
    return %1, %c0_i32 : i32, i32
  }
  func.func @transform_1(%arg0: i32, %arg1: i32) -> (i32, i32) {
    %c1_i32 = arith.constant 1 : i32
    %0 = arith.muli %arg0, %c1_i32 : i32
    %1 = arith.addi %0, %arg1 : i32
    %c0_i32 = arith.constant 0 : i32
    %c0_i32_0 = arith.constant 0 : i32
    return %1, %c0_i32 : i32, i32
  }
  func.func @transform_2(%arg0: i32, %arg1: i32) -> (i32, i32) {
    %c0_i32 = arith.constant 0 : i32
    %c0_i32_0 = arith.constant 0 : i32
    return %arg0, %c0_i32 : i32, i32
  }
  func.func @transform_3(%arg0: i32, %arg1: i32) -> (i32, i32) {
    %c0_i32 = arith.constant 0 : i32
    %c0_i32_0 = arith.constant 0 : i32
    return %arg0, %c0_i32 : i32, i32
  }
}

</mosaic_0001>

<bundles_post_ra>
// kernel: tpu_custom_call.1
= control target key start
LH: loop header
LB: loop body
LE: loop exit
PB: predicated region body
PF: predicated region fallthrough
CT: control target
= control target key end

     0   :  { %9 = vsyncpa [#allocation5], 0  ;;  %s364_s0 = inlined_call_operand.hbm [shape: f32[16,128], index: 0, kind: input, shape index: {}]   ;;  %s365_s1 = inlined_call_operand.hbm [shape: f32[16,128], index: 1, kind: input, shape index: {}]   ;;  %s366_s2 = inlined_call_operand.hbm [shape: f32[8,128], index: 2, kind: output, shape index: {0}]   ;;  %s367_s3 = inlined_call_operand.hbm [shape: f32[8,128], index: 3, kind: output, shape index: {1}]  }
   0x1   :  { %10 = vsyncpa [#allocation8], 0 }
   0x2   :  { %11 = vsyncpa [#allocation6], 0 }
   0x3   :  { %12 = vsyncpa [#allocation11], 0  ;;  %s271_s12 = smov [#allocation4]   ;;  %s175_s16 = scalar_lea.hbm %s364_s0, 256 }
   0x4   :  { %s22_s13 = sshll.u32 %s271_s12, 4  ;;  %p176_p0 = scmp.ne.s32.totalorder %s364_s0, %s175_s16  ;;  %s23_s13 = int_to_ptr.vmem [resolvable:$true] %s22_s13 }
   0x5   :  { %p179_p1 = scmp.lt.u32.totalorder %s175_s16, %s364_s0 }
   0x7   :  { %p181_p2 = pnand %p179_p1, %p176_p0 }
   0x9   :  { %184 = shalt.err (!%p181_p2)
}
   0xa   :  { %s185_s21 = scalar_lea.vmem %s23_s13, 256  ;;  %p190_p4 = scmp.lt.s32.totalorder %s23_s13, %s23_s13 }
   0xb   :  { %p186_p3 = scmp.ne.s32.totalorder %s23_s13, %s185_s21  ;;  %p191_p5 = scmp.lt.s32.totalorder %s185_s21, %s185_s21 }
   0xd   :  { %p192_p6 = por %p191_p5, %p190_p4 }
   0xf   :  { %p193_p7 = pnand %p192_p6, %p186_p3 }
  0x11   :  { %196 = shalt.err (!%p193_p7)
}
  0x12   :  { %s272_s22 = smov 128   ;;  %s273_s23 = smov 8  }
  0x13   :  { %28 = dma.hbm_to_vmem [thread:$0]  %s364_s0, 256, %s23_s13, [#allocation5], %s272_s22, %s272_s22, %s273_s23  }
  0x14   :  { %s274_s26 = smov [#allocation7]   ;;  %s197_s30 = scalar_lea.hbm %s365_s1, 256 }
  0x15   :  { %s38_s27 = sshll.u32 %s274_s26, 4  ;;  %p198_p8 = scmp.ne.s32.totalorder %s365_s1, %s197_s30  ;;  %s39_s27 = int_to_ptr.vmem [resolvable:$true] %s38_s27 }
  0x16   :  { %p201_p9 = scmp.lt.u32.totalorder %s197_s30, %s365_s1 }
  0x18   :  { %p203_p10 = pnand %p201_p9, %p198_p8 }
  0x1a   :  { %206 = shalt.err (!%p203_p10)
}
  0x1b   :  { %s207_s8 = scalar_lea.vmem %s39_s27, 256  ;;  %p212_p12 = scmp.lt.s32.totalorder %s39_s27, %s39_s27 }
  0x1c   :  { %p208_p11 = scmp.ne.s32.totalorder %s39_s27, %s207_s8  ;;  %p213_p13 = scmp.lt.s32.totalorder %s207_s8, %s207_s8 }
  0x1e   :  { %p214_p0 = por %p213_p13, %p212_p12 }
  0x20   :  { %p215_p1 = pnand %p214_p0, %p208_p11 }
  0x22   :  { %218 = shalt.err (!%p215_p1)
}
  0x23   :  { %44 = dma.hbm_to_vmem [thread:$0]  %s365_s1, 256, %s39_s27, [#allocation8], %s272_s22, %s272_s22, %s273_s23  }
  0x24   :  { %263 = dma.done.wait [#allocation5], 256  }
  0x25   :  { %264 = vsyncadd [#allocation5], 4294967040 }
  0x26   :  { %265 = dma.done.wait [#allocation8], 256  }
  0x27   :  { %266 = vsyncadd [#allocation8], 4294967040  ;;  %v61_v0 = vld [vmem:[#allocation4] sm:$0xff]  ;;  %v62_v1 = vld [vmem:[#allocation4 + $0x8] sm:$0xff]  ;;  %s275_s10 = smov [#allocation10]   ;;  %v276_v8 = vmov 0.0  }
  0x28   :  { %v75_v2 = vsub.f32 1.0, %v61_v0  ;;  %v322_v3 = vld [vmem:[#allocation7] sm:$0xff]  ;;  %v324_v4 = vld [vmem:[#allocation7 + $0x8] sm:$0xff]  ;;  %v76_v5 = vsub.f32 1.0, %v62_v1  ;;  %s142_s1 = sshll.u32 %s275_s10, 4  ;;  %s143_s1 = int_to_ptr.vmem [resolvable:$true] %s142_s1 }
  0x29   :  { %vm65_vm0 = vcmp.eq.f32.partialorder %v322_v3, 1.0  ;;  %vm66_vm1 = vcmp.eq.f32.partialorder %v324_v4, 1.0  ;;  %s219_s11 = scalar_lea.vmem %s143_s1, 128  ;;  %p224_p3 = scmp.lt.s32.totalorder %s143_s1, %s143_s1 }
  0x2a   :  { %v77_v6 = vadd.f32 1e-12, %v75_v2  ;;  %v78_v7 = vadd.f32 1e-12, %v76_v5  ;;  %v109_v9 = vsel %vm65_vm0, 1.0, %v276_v8  ;;  %v110_v10 = vsel %vm66_vm1, 1.0, %v276_v8  ;;  %p220_p2 = scmp.ne.s32.totalorder %s143_s1, %s219_s11  ;;  %p225_p4 = scmp.lt.s32.totalorder %s219_s11, %s219_s11 }
  0x2b   :  { %v116_v11 = vadd.f32 %v110_v10, %v109_v9 }
  0x2c   :  { %163 = vlog2.f32 %v77_v6  ;;  %p226_p5 = por %p225_p4, %p224_p3 }
  0x2d   :  { %165 = vlog2.f32 %v78_v7  ;;  %125 = vst [vmem:[#allocation10] sm:$0xff] %v116_v11 }
  0x2e   :  { %p227_p6 = pnand %p226_p5, %p220_p2 }
  0x30   :  { %230 = shalt.err (!%p227_p6)
}
  0x31   :  { %s231_s14 = scalar_lea.hbm %s367_s3, 128 }
  0x32   :  { %p232_p7 = scmp.ne.s32.totalorder %s367_s3, %s231_s14  ;;  %p235_p8 = scmp.lt.u32.totalorder %s231_s14, %s367_s3 }
  0x34   :  { %p237_p9 = pnand %p235_p8, %p232_p7 }
  0x36   :  { %240 = shalt.err (!%p237_p9)
}
  0x37   :  { %145 = dma.vmem_to_hbm [thread:$0]  %s143_s1, 128, %s367_s3, [#allocation11]   ;;  %v91_v12 = vadd.f32 1e-12, %v61_v0  ;;  %v92_v13 = vadd.f32 1e-12, %v62_v1  ;;  %v164_v15 = vpop.eup %163  ;;  %v99_v26 = vmul.f32 %v61_v0, %v61_v0  ;;  %v100_v29 = vmul.f32 %v62_v1, %v62_v1 }
  0x38   :  { %v83_v14 = vmul.f32 2.0, %v75_v2  ;;  %v84_v16 = vmul.f32 2.0, %v76_v5  ;;  %v166_v17 = vpop.eup %165  ;;  %v69_v18 = vsub.f32 1.0, %v322_v3  ;;  %v80_v19 = vmul.f32 0.6931472, %v164_v15  ;;  %s277_s3 = smov [#allocation9]  }
  0x39   :  { %167 = vlog2.f32 %v91_v12  ;;  %v70_v20 = vsub.f32 1.0, %v324_v4  ;;  %v82_v21 = vmul.f32 0.6931472, %v166_v17  ;;  %vm67_vm2 = vcmp.lt.f32.partialorder %v322_v3, 1.0  ;;  %s132_s21 = sshll.u32 %s277_s3, 4  ;;  %s133_s21 = int_to_ptr.vmem [resolvable:$true] %s132_s21 }
  0x3a   :  { %169 = vlog2.f32 %v92_v13  ;;  %v85_v22 = vmul.f32 %v83_v14, %v80_v19  ;;  %v71_v24 = vmul.f32 %v69_v18, %v69_v18  ;;  %v101_v31 = vmul.f32 %v99_v26, %v80_v19  ;;  %s241_s22 = scalar_lea.vmem %s133_s21, 128  ;;  %p246_p11 = scmp.lt.s32.totalorder %s133_s21, %s133_s21 }
  0x3b   :  { %v86_v23 = vmul.f32 %v84_v16, %v82_v21  ;;  %v72_v27 = vmul.f32 %v70_v20, %v70_v20  ;;  %v102_v33 = vmul.f32 %v100_v29, %v82_v21  ;;  %vm68_vm3 = vcmp.lt.f32.partialorder %v324_v4, 1.0  ;;  %p242_p10 = scmp.ne.s32.totalorder %s133_s21, %s241_s22  ;;  %p247_p12 = scmp.lt.s32.totalorder %s241_s22, %s241_s22 }
  0x3c   :  { %v87_v25 = vmul.f32 1.442695, %v85_v22  ;;  %v73_v30 = vmul.f32 %v71_v24, %v71_v24 }
  0x3d   :  { %v89_v28 = vmul.f32 1.442695, %v86_v23  ;;  %v74_v32 = vmul.f32 %v72_v27, %v72_v27  ;;  %p248_p13 = por %p247_p12, %p246_p11 }
  0x3e   :  { %171 = vpow2.f32 %v87_v25  ;;  %v103_v36 = vmul.f32 %v101_v31, %v73_v30 }
  0x3f   :  { %173 = vpow2.f32 %v89_v28  ;;  %v104_v38 = vmul.f32 %v102_v33, %v74_v32  ;;  %p249_p0 = pnand %p248_p13, %p242_p10 }
  0x40   :  { %v105_v41 = vsel %vm67_vm2, %v103_v36, 0.0 }
  0x41   :  { %v106_v44 = vsel %vm68_vm3, %v104_v38, 0.0 }
  0x43   :  { %v168_v34 = vpop.eup %167 }
  0x44   :  { %v170_v35 = vpop.eup %169  ;;  %v94_v37 = vmul.f32 0.6931472, %v168_v34 }
  0x45   :  { %v96_v39 = vmul.f32 0.6931472, %v170_v35 }
  0x48   :  { %v172_v40 = vpop.eup %171 }
  0x49   :  { %v174_v42 = vpop.eup %173  ;;  %v97_v43 = vmul.f32 %v172_v40, %v94_v37 }
  0x4a   :  { %v98_v45 = vmul.f32 %v174_v42, %v96_v39 }
  0x4b   :  { %v107_v46 = vsel %vm65_vm0, %v97_v43, %v105_v41 }
  0x4c   :  { %v108_v47 = vsel %vm66_vm1, %v98_v45, %v106_v44 }
  0x4d   :  { %v112_v48 = vadd.f32 %v108_v47, %v107_v46 }
  0x4f   :  { %123 = vst [vmem:[#allocation9] sm:$0xff] %v112_v48 }
  0x50   :  { %252 = shalt.err (!%p249_p0)
}
  0x51   :  { %s253_s25 = scalar_lea.hbm %s366_s2, 128 }
  0x52   :  { %p254_p1 = scmp.ne.s32.totalorder %s366_s2, %s253_s25  ;;  %p257_p2 = scmp.lt.u32.totalorder %s253_s25, %s366_s2 }
  0x54   :  { %p259_p3 = pnand %p257_p2, %p254_p1 }
  0x56   :  { %262 = shalt.err (!%p259_p3)
}
  0x57   :  { %135 = dma.vmem_to_hbm [thread:$0]  %s133_s21, 128, %s366_s2, [#allocation6]  }
  0x58   :  { %267 = dma.done.wait [#allocation6], 128  }
  0x59   :  { %268 = vsyncadd [#allocation6], 4294967168 }
  0x5a   :  { %269 = dma.done.wait [#allocation11], 128  }
  0x5b   :  { %270 = vsyncadd [#allocation11], 4294967168 }
  0x5c   :  { %152 = vsyncpa [#allocation5], 1 }
  0x5d   :  { %153 = vsyncpa [#allocation8], 1 }
  0x5e   :  { %154 = vsyncpa [#allocation6], 1 }
  0x5f   :  { %155 = vsyncpa [#allocation11], 1 }

</bundles_post_ra>
